<compile_context>
chip_gen: v5e
topology: v5e:2x2
jax: 0.10.0
libtpu: 0.0.40
codegen_flags: <defaults>
</compile_context>

<pallas_src>
import functools

import jax
import jax.numpy as jnp
from jax.experimental import pallas as pl
from jax.experimental.pallas import tpu as pltpu


_MIN_SUBCOPY_BYTES = 512 * 1024   # floor per sub-copy (amortize ~µs DMA setup)
_COL_ALIGN = 128                  # sub-chunk column boundaries on lane multiples
_DEFAULT_MIN_PALLAS_BYTES = 2 << 20  # below this, use jnp.concatenate


def _device_dma_target():
    """Per-generation target for total concurrent DMA descriptors."""
    try:
        kind = jax.devices()[0].device_kind.lower()
    except Exception:
        return 6
    if "v5" in kind or "lite" in kind:
        return 4   # ~0.8 TB/s HBM: a few streams already saturate
    if "v6" in kind:
        return 6   # ~1.4 TB/s
    return 8       # v7x (~3.2 TB/s per TC) and newer


def _split_columns(total_cols, n_chunks, align=_COL_ALIGN):
    """Split [0, total_cols) into <= n_chunks (start, size) pieces.

    Piece boundaries are multiples of `align` (except possibly the last);
    pieces exactly cover [0, total_cols) with no gaps or overlap.
    """
    if n_chunks <= 1 or total_cols <= align:
        return [(0, total_cols)]
    base = -(-total_cols // n_chunks)        # ceil(total / n)
    base = -(-base // align) * align         # round up to align
    pieces = []
    start = 0
    while start < total_cols:
        size = min(base, total_cols - start)
        pieces.append((start, size))
        start += size
    return pieces


def _concat_dma_kernel(*refs, num_inputs, copy_plan):
    """refs = (in_ref_0 ... in_ref_{k-1}, out_ref, dma_sem).

    in_ref_i : (N, C_i*H*W) in HBM (ANY memory space)
    out_ref  : (N, C_total*H*W) in HBM (ANY memory space)
    dma_sem  : DMA semaphore array, one per sub-copy.

    copy_plan: tuple of (input_idx, src_col_start, dst_col_start, n_cols),
    all static Python ints.  All DMAs are started before any wait so they run
    concurrently on the DMA engines (do NOT interleave start/wait per copy —
    that serializes back to single-stream bandwidth).
    """
    in_refs = refs[:num_inputs]
    out_ref = refs[num_inputs]
    sem = refs[num_inputs + 1]

    copies = []
    for j, (i, src_off, dst_off, sz) in enumerate(copy_plan):
        cp = pltpu.make_async_copy(
            in_refs[i].at[:, pl.ds(src_off, sz)],
            out_ref.at[:, pl.ds(dst_off, sz)],
            sem.at[j],
        )
        cp.start()
        copies.append(cp)

    for cp in copies:
        cp.wait()


def feature_concat(layers, outputs, *, min_pallas_bytes=_DEFAULT_MIN_PALLAS_BYTES):
    """JAX/Pallas equivalent of FeatureConcat.forward(x, outputs).

    `layers`: python list of indices into `outputs`.
    `outputs`: list of jnp arrays, each (N, C_i, H, W), same dtype, same N/H/W.
    """
    multiple = len(layers) > 1
    if not multiple:
        # Module just returns the selected feature map; no compute, no copy.
        return outputs[layers[0]]

    sel = [outputs[i] for i in layers]
    n, _, h, w = sel[0].shape
    dtype = sel[0].dtype
    for a in sel:
        assert a.ndim == 4 and a.shape[0] == n and a.shape[2] == h and a.shape[3] == w, (
            f"FeatureConcat: N/H/W mismatch: {a.shape} vs (N={n}, H={h}, W={w})")
        assert a.dtype == dtype, (
            f"FeatureConcat: dtype mismatch: {a.dtype} vs {dtype}")

    chans = [a.shape[1] for a in sel]
    c_total = sum(chans)
    itemsize = jnp.dtype(dtype).itemsize
    total_bytes = n * c_total * h * w * itemsize

    # Small concats: custom-call + per-DMA fixed overhead dominates and the
    # Pallas call is a fusion barrier -> let XLA's native concat handle it.
    if total_bytes < min_pallas_bytes:
        return jnp.concatenate(sel, axis=1)

    # Flatten to (N, C_i*H*W): concat along C becomes a contiguous column-slab
    # copy into the flat (N, C_total*H*W) output.  Reshapes are free
    # (contiguous) on both ends.
    slab_cols = [c * h * w for c in chans]
    flat_in = [a.reshape(n, s) for a, s in zip(sel, slab_cols)]

    # ---- sub-copy planning: split each slab into concurrent DMAs ----------
    target_dmas = _device_dma_target()
    copy_plan = []
    out_off = 0
    for i, s_cols in enumerate(slab_cols):
        bytes_i = n * s_cols * itemsize
        # Share of the concurrency target, proportional to this input's bytes,
        # capped so every sub-copy stays >= _MIN_SUBCOPY_BYTES.
        n_i = max(1, int(round(target_dmas * bytes_i / total_bytes)))
        n_i = min(n_i, max(1, bytes_i // _MIN_SUBCOPY_BYTES))
        for (c_start, c_sz) in _split_columns(s_cols, n_i):
            copy_plan.append((i, c_start, out_off + c_start, c_sz))
        out_off += s_cols
    assert out_off == c_total * h * w  # slabs exactly tile the flat output
    copy_plan = tuple(copy_plan)

    k = len(sel)
    kernel = functools.partial(
        _concat_dma_kernel, num_inputs=k, copy_plan=copy_plan)

    flat_out = pl.pallas_call(
        kernel,
        out_shape=jax.ShapeDtypeStruct((n, c_total * h * w), dtype),
        in_specs=[pl.BlockSpec(memory_space=pl.ANY)] * k,
        out_specs=pl.BlockSpec(memory_space=pl.ANY),
        scratch_shapes=[pltpu.SemaphoreType.DMA((len(copy_plan),))],
        cost_estimate=pl.CostEstimate(
            flops=0, transcendentals=0, bytes_accessed=2 * total_bytes),
    )(*flat_in)

    return flat_out.reshape(n, c_total, h, w)


if __name__ == "__main__":
    key = jax.random.PRNGKey(0)
    k0, k1, k2, k3, k4 = jax.random.split(key, 5)

    # Small synthetic "outputs" list of feature maps (NCHW), as produced by
    # earlier layers of the network.
    n, h, w = 2, 16, 16
    outputs = [
        jax.random.normal(k0, (n, 4, h, w), dtype=jnp.float32),
        jax.random.normal(k1, (n, 8, h, w), dtype=jnp.float32),
        jax.random.normal(k2, (n, 4, h, w), dtype=jnp.float32),
    ]

    # --- multiple-layer case, forced through the Pallas DMA path ---
    layers = [0, 2, 1]
    out = feature_concat(layers, outputs, min_pallas_bytes=0)
    out = jax.block_until_ready(out)
    ref = jnp.concatenate([outputs[i] for i in layers], axis=1)
    assert out.shape == ref.shape, (out.shape, ref.shape)
    assert out.dtype == ref.dtype
    assert jnp.array_equal(out, ref), "concat mismatch (pallas path)"

    # --- multiple-layer case through the default small-tensor fallback ---
    layers2 = [1, 2]
    out2 = jax.block_until_ready(feature_concat(layers2, outputs))
    ref2 = jnp.concatenate([outputs[i] for i in layers2], axis=1)
    assert jnp.array_equal(out2, ref2), "concat mismatch (fallback path)"

    # --- moderately larger case: exercises multi-sub-copy DMA splitting ---
    nh, hh, wh = 2, 64, 64
    big_outputs = [
        jax.random.normal(k3, (nh, 96, hh, wh), dtype=jnp.float32),  # ~3 MiB
        jax.random.normal(k4, (nh, 32, hh, wh), dtype=jnp.float32),  # ~1 MiB
    ]
    out3 = jax.block_until_ready(feature_concat([0, 1], big_outputs))
    ref3 = jnp.concatenate(big_outputs, axis=1)
    assert jnp.array_equal(out3, ref3), "concat mismatch (multi-chunk path)"

    # --- single-layer case (identity passthrough) ---
    out_single = jax.block_until_ready(feature_concat([1], outputs))
    assert jnp.array_equal(out_single, outputs[1])

    print("KERNEL_OK")
</pallas_src>

<mosaic_0001>
module attributes {stable_mosaic.version = 11 : i64} {
  func.func @_concat_dma_kernel(%arg0: memref<2x1024xf32, #tpu.memory_space<any>>, %arg1: memref<2x1024xf32, #tpu.memory_space<any>>, %arg2: memref<2x2048xf32, #tpu.memory_space<any>>, %arg3: memref<2x4096xf32, #tpu.memory_space<any>>, %arg4: memref<3x!tpu.dma_semaphore, #tpu.memory_space<semaphore_mem>>) attributes {dimension_semantics = [], scalar_prefetch = 0 : i64, scratch_operands = 1 : i64, tpu.core_type = #tpu.core_type<tc>} {
    %c0_i32 = arith.constant 0 : i32
    %c0_i32_0 = arith.constant 0 : i32
    %c0_i32_1 = arith.constant 0 : i32
    %0 = tpu.memref_slice %arg0[%c0_i32_0, %c0_i32_1] : memref<2x1024xf32, #tpu.memory_space<any>> -> memref<2x1024xf32, #tpu.memory_space<any>>
    %c0_i32_2 = arith.constant 0 : i32
    %c0_i32_3 = arith.constant 0 : i32
    %1 = tpu.memref_slice %arg3[%c0_i32_2, %c0_i32_3] : memref<2x4096xf32, #tpu.memory_space<any>> -> memref<2x1024xf32, #tpu.memory_space<any>>
    %2 = tpu.memref_slice %arg4[%c0_i32] : memref<3x!tpu.dma_semaphore, #tpu.memory_space<semaphore_mem>> -> memref<1x!tpu.dma_semaphore, #tpu.memory_space<semaphore_mem>>
    %3 = tpu.memref_squeeze %2 : memref<1x!tpu.dma_semaphore, #tpu.memory_space<semaphore_mem>> -> memref<!tpu.dma_semaphore, #tpu.memory_space<semaphore_mem>>
    tpu.enqueue_dma source(%0 : memref<2x1024xf32, #tpu.memory_space<any>>) target(%1 : memref<2x1024xf32, #tpu.memory_space<any>>) target_semaphore(%3 : memref<!tpu.dma_semaphore, #tpu.memory_space<semaphore_mem>>)
    %c1_i32 = arith.constant 1 : i32
    %c0_i32_4 = arith.constant 0 : i32
    %c0_i32_5 = arith.constant 0 : i32
    %4 = tpu.memref_slice %arg1[%c0_i32_4, %c0_i32_5] : memref<2x1024xf32, #tpu.memory_space<any>> -> memref<2x1024xf32, #tpu.memory_space<any>>
    %c0_i32_6 = arith.constant 0 : i32
    %c1024_i32 = arith.constant 1024 : i32
    %5 = tpu.memref_slice %arg3[%c0_i32_6, %c1024_i32] : memref<2x4096xf32, #tpu.memory_space<any>> -> memref<2x1024xf32, #tpu.memory_space<any>>
    %6 = tpu.memref_slice %arg4[%c1_i32] : memref<3x!tpu.dma_semaphore, #tpu.memory_space<semaphore_mem>> -> memref<1x!tpu.dma_semaphore, #tpu.memory_space<semaphore_mem>>
    %7 = tpu.memref_squeeze %6 : memref<1x!tpu.dma_semaphore, #tpu.memory_space<semaphore_mem>> -> memref<!tpu.dma_semaphore, #tpu.memory_space<semaphore_mem>>
    tpu.enqueue_dma source(%4 : memref<2x1024xf32, #tpu.memory_space<any>>) target(%5 : memref<2x1024xf32, #tpu.memory_space<any>>) target_semaphore(%7 : memref<!tpu.dma_semaphore, #tpu.memory_space<semaphore_mem>>)
    %c2_i32 = arith.constant 2 : i32
    %c0_i32_7 = arith.constant 0 : i32
    %c0_i32_8 = arith.constant 0 : i32
    %8 = tpu.memref_slice %arg2[%c0_i32_7, %c0_i32_8] : memref<2x2048xf32, #tpu.memory_space<any>> -> memref<2x2048xf32, #tpu.memory_space<any>>
    %c0_i32_9 = arith.constant 0 : i32
    %c2048_i32 = arith.constant 2048 : i32
    %9 = tpu.memref_slice %arg3[%c0_i32_9, %c2048_i32] : memref<2x4096xf32, #tpu.memory_space<any>> -> memref<2x2048xf32, #tpu.memory_space<any>>
    %10 = tpu.memref_slice %arg4[%c2_i32] : memref<3x!tpu.dma_semaphore, #tpu.memory_space<semaphore_mem>> -> memref<1x!tpu.dma_semaphore, #tpu.memory_space<semaphore_mem>>
    %11 = tpu.memref_squeeze %10 : memref<1x!tpu.dma_semaphore, #tpu.memory_space<semaphore_mem>> -> memref<!tpu.dma_semaphore, #tpu.memory_space<semaphore_mem>>
    tpu.enqueue_dma source(%8 : memref<2x2048xf32, #tpu.memory_space<any>>) target(%9 : memref<2x2048xf32, #tpu.memory_space<any>>) target_semaphore(%11 : memref<!tpu.dma_semaphore, #tpu.memory_space<semaphore_mem>>)
    %c0_i32_10 = arith.constant 0 : i32
    %c0_i32_11 = arith.constant 0 : i32
    %c0_i32_12 = arith.constant 0 : i32
    %12 = tpu.memref_slice %arg0[%c0_i32_11, %c0_i32_12] : memref<2x1024xf32, #tpu.memory_space<any>> -> memref<2x1024xf32, #tpu.memory_space<any>>
    %c0_i32_13 = arith.constant 0 : i32
    %c0_i32_14 = arith.constant 0 : i32
    %13 = tpu.memref_slice %arg3[%c0_i32_13, %c0_i32_14] : memref<2x4096xf32, #tpu.memory_space<any>> -> memref<2x1024xf32, #tpu.memory_space<any>>
    %14 = tpu.memref_slice %arg4[%c0_i32_10] : memref<3x!tpu.dma_semaphore, #tpu.memory_space<semaphore_mem>> -> memref<1x!tpu.dma_semaphore, #tpu.memory_space<semaphore_mem>>
    %15 = tpu.memref_squeeze %14 : memref<1x!tpu.dma_semaphore, #tpu.memory_space<semaphore_mem>> -> memref<!tpu.dma_semaphore, #tpu.memory_space<semaphore_mem>>
    tpu.wait_dma2 semaphore(%15 : memref<!tpu.dma_semaphore, #tpu.memory_space<semaphore_mem>>) src(%12 : memref<2x1024xf32, #tpu.memory_space<any>>) dst(%13 : memref<2x1024xf32, #tpu.memory_space<any>>)
    %c1_i32_15 = arith.constant 1 : i32
    %c0_i32_16 = arith.constant 0 : i32
    %c0_i32_17 = arith.constant 0 : i32
    %16 = tpu.memref_slice %arg1[%c0_i32_16, %c0_i32_17] : memref<2x1024xf32, #tpu.memory_space<any>> -> memref<2x1024xf32, #tpu.memory_space<any>>
    %c0_i32_18 = arith.constant 0 : i32
    %c1024_i32_19 = arith.constant 1024 : i32
    %17 = tpu.memref_slice %arg3[%c0_i32_18, %c1024_i32_19] : memref<2x4096xf32, #tpu.memory_space<any>> -> memref<2x1024xf32, #tpu.memory_space<any>>
    %18 = tpu.memref_slice %arg4[%c1_i32_15] : memref<3x!tpu.dma_semaphore, #tpu.memory_space<semaphore_mem>> -> memref<1x!tpu.dma_semaphore, #tpu.memory_space<semaphore_mem>>
    %19 = tpu.memref_squeeze %18 : memref<1x!tpu.dma_semaphore, #tpu.memory_space<semaphore_mem>> -> memref<!tpu.dma_semaphore, #tpu.memory_space<semaphore_mem>>
    tpu.wait_dma2 semaphore(%19 : memref<!tpu.dma_semaphore, #tpu.memory_space<semaphore_mem>>) src(%16 : memref<2x1024xf32, #tpu.memory_space<any>>) dst(%17 : memref<2x1024xf32, #tpu.memory_space<any>>)
    %c2_i32_20 = arith.constant 2 : i32
    %c0_i32_21 = arith.constant 0 : i32
    %c0_i32_22 = arith.constant 0 : i32
    %20 = tpu.memref_slice %arg2[%c0_i32_21, %c0_i32_22] : memref<2x2048xf32, #tpu.memory_space<any>> -> memref<2x2048xf32, #tpu.memory_space<any>>
    %c0_i32_23 = arith.constant 0 : i32
    %c2048_i32_24 = arith.constant 2048 : i32
    %21 = tpu.memref_slice %arg3[%c0_i32_23, %c2048_i32_24] : memref<2x4096xf32, #tpu.memory_space<any>> -> memref<2x2048xf32, #tpu.memory_space<any>>
    %22 = tpu.memref_slice %arg4[%c2_i32_20] : memref<3x!tpu.dma_semaphore, #tpu.memory_space<semaphore_mem>> -> memref<1x!tpu.dma_semaphore, #tpu.memory_space<semaphore_mem>>
    %23 = tpu.memref_squeeze %22 : memref<1x!tpu.dma_semaphore, #tpu.memory_space<semaphore_mem>> -> memref<!tpu.dma_semaphore, #tpu.memory_space<semaphore_mem>>
    tpu.wait_dma2 semaphore(%23 : memref<!tpu.dma_semaphore, #tpu.memory_space<semaphore_mem>>) src(%20 : memref<2x2048xf32, #tpu.memory_space<any>>) dst(%21 : memref<2x2048xf32, #tpu.memory_space<any>>)
    return
  }
}

</mosaic_0001>

<bundles_post_ra>
// kernel: tpu_custom_call.1
= control target key start
LH: loop header
LB: loop body
LE: loop exit
PB: predicated region body
PF: predicated region fallthrough
CT: control target
= control target key end

     0   :  { %s90_s21 = smov [#allocation2]   ;;  %s91_s22 = smov [#allocation3]   ;;  %s135_s0 = inlined_call_operand.hbm [shape: f32[2,1024], index: 0, kind: input, shape index: {}]   ;;  %s136_s3 = inlined_call_operand.hbm [shape: f32[2,4096], index: 3, kind: output, shape index: {}]   ;;  %s137_s1 = inlined_call_operand.hbm [shape: f32[2,1024], index: 1, kind: input, shape index: {}]   ;;  %s138_s2 = inlined_call_operand.hbm [shape: f32[2,2048], index: 2, kind: input, shape index: {}]  }
   0x1   :  { %s12_s14 = sshll.u32 %s135_s0, 4  ;;  %s14_s17 = sshll.u32 %s136_s3, 4  ;;  %s13_s14 = int_to_ptr.hbm [resolvable:$true] %s12_s14  ;;  %s15_s17 = int_to_ptr.hbm [resolvable:$true] %s14_s17 }
   0x2   :  { %s19_s20 = scalar_lea.hbm %s136_s3, 16  ;;  %s92_s23 = smov 0  }
   0x3   :  { %18 = dma.general %s13_s14, 256, %s15_s17, %s90_s21, %s91_s22, [#allocation4], %s92_s23, 0  }
   0x4   :  { %s25_s26 = sshll.u32 %s137_s1, 4  ;;  %s27_s27 = sshll.u32 %s19_s20, 4  ;;  %s26_s26 = int_to_ptr.hbm [resolvable:$true] %s25_s26  ;;  %s28_s27 = int_to_ptr.hbm [resolvable:$true] %s27_s27 }
   0x5   :  { %s93_s0 = smov [#allocation2 + $0x1]   ;;  %s94_s28 = smov [#allocation5]  }
   0x6   :  { %31 = dma.general %s26_s26, 256, %s28_s27, %s93_s0, %s94_s28, [#allocation6], %s92_s23, 0  }
   0x7   :  { %s32_s4 = scalar_lea.hbm %s136_s3, 32  ;;  %s38_s7 = sshll.u32 %s138_s2, 4  ;;  %s39_s7 = int_to_ptr.hbm [resolvable:$true] %s38_s7 }
   0x8   :  { %s40_s8 = sshll.u32 %s32_s4, 4  ;;  %s95_s9 = smov [#allocation2 + $0x2]   ;;  %s41_s8 = int_to_ptr.hbm [resolvable:$true] %s40_s8 }
   0x9   :  { %s96_s10 = smov [#allocation7]  }
   0xa   :  { %44 = dma.general %s39_s7, 512, %s41_s8, %s95_s9, %s96_s10, [#allocation8], %s92_s23, 0  }
   0xb   :  { %84 = dma.done.wait [#allocation2], 256 }
   0xc   :  { %85 = vsyncadd [#allocation2], 4294967040 }
   0xd   :  { %86 = dma.done.wait [#allocation2 + $0x1], 256 }
   0xe   :  { %87 = vsyncadd [#allocation2 + $0x1], 4294967040 }
   0xf   :  { %88 = dma.done.wait [#allocation2 + $0x2], 512 }
  0x10   :  { %89 = vsyncadd [#allocation2 + $0x2], 4294966784 }
  0x11   :  { %54 = vsyncmov [#allocation2] }
  0x14   :  { %s55_s1 = vpop.sfrf %54 }
  0x15   :  { %p74_p0 = scmp.ne.s32.totalorder %s55_s1, 0 }
  0x17   :  { %59 = shalt.err (%p74_p0)  }
  0x18   :  { %61 = vsyncmov [#allocation2 + $0x1] }
  0x1b   :  { %s62_s3 = vpop.sfrf %61 }
  0x1c   :  { %p75_p1 = scmp.ne.s32.totalorder %s62_s3, 0 }
  0x1e   :  { %66 = shalt.err (%p75_p1)  }
  0x1f   :  { %68 = vsyncmov [#allocation2 + $0x2] }
  0x22   :  { %s69_s2 = vpop.sfrf %68 }
  0x23   :  { %p76_p2 = scmp.ne.s32.totalorder %s69_s2, 0 }
  0x25   :  { %73 = shalt.err (%p76_p2)  }

</bundles_post_ra>
